<compile_context>
chip_gen: v6e
topology: v6e:2x2x1
jax: 0.10.0
libtpu: 0.0.40
codegen_flags: <defaults>
</compile_context>

<pallas_src>
import jax
import jax.numpy as jnp
from jax.experimental import pallas as pl
from jax.experimental.pallas import tpu as pltpu


# ----------------------------------------------------------------------------
# Pallas kernel
# ----------------------------------------------------------------------------
def _encode_kernel(x_ref, w1t_ref, b1_ref, w2t_ref, b2_ref, out_ref, feat_ref):
    """Fused pointwise encoder, channel-major / lane-dense, MXU contractions.

    x_ref:    (Cin,  Tt)   input tokens for one (image, token-tile) block
    w1t_ref:  (Chid, Cin)  first-layer weight, transposed
    b1_ref:   (Chid, 1)
    w2t_ref:  (Cout, Chid) second-layer weight, transposed
    b2_ref:   (Cout, 1)
    out_ref:  (Cout, Tt)
    feat_ref: (Chid, Tt)   hooked feature = gelu(W1^T x + b1)
    """
    x = x_ref[...].astype(jnp.float32)

    # ---- Layer 1 on the MXU (f32 operands, f32 accumulation). --------------
    h = jnp.dot(w1t_ref[...], x, preferred_element_type=jnp.float32)
    h = jax.nn.gelu(h + b1_ref[...], approximate=True)
    feat_ref[...] = h.astype(feat_ref.dtype)

    # ---- Layer 2 on the MXU. ------------------------------------------------
    o = jnp.dot(w2t_ref[...], h, preferred_element_type=jnp.float32)
    out_ref[...] = (o + b2_ref[...]).astype(out_ref.dtype)


# ----------------------------------------------------------------------------
# Wrapper
# ----------------------------------------------------------------------------
def _round_up(x, m):
    return ((x + m - 1) // m) * m


def _pick_tile_t(hw, n, max_tile=16384):
    """Pick the lane-axis (token) tile size.

    Preference order:
      1. multiple of 128 that divides H*W (all stores stay unmasked vst),
      2. otherwise the largest multiple of 128 <= max_tile (ragged last tile
         uses masked stores, which is still correct).
    Also ensure the total grid has >= 2 steps so both v7x TensorCores get work.
    max_tile=16384 keeps double-buffered per-step VMEM < 6 MiB, comfortably
    inside even v5e's 16 MiB scoped-VMEM default.
    """
    hw128 = _round_up(hw, 128)
    tile = None
    for t in range(min(max_tile, hw128), 0, -128):  # <= 128 python iterations
        if hw % t == 0:
            tile = t
            break
    if tile is None:
        tile = min(max_tile, hw128)
    # v7x has 2 TensorCores sharded over the parallel grid axes: make sure the
    # grid exposes at least 2 steps when the problem allows it.
    if n * ((hw + tile - 1) // tile) < 2 and hw > 128:
        tile = min(tile, _round_up((hw + 1) // 2, 128))
    return tile


def _pallas_encode(x_flat, w1t, b1, w2t, b2, *, tile_t, out_dtype):
    """x_flat: (N, Cin, HW) channel-major tokens.

    Returns (out (N, Cout, HW), feat (N, Chid, HW)) — both lane-dense on HW.
    """
    N, Cin, HW = x_flat.shape
    Chid = w1t.shape[0]
    Cout = w2t.shape[0]

    grid = (N, pl.cdiv(HW, tile_t))  # no divisibility requirement on HW
    full = lambda n, t: (0, 0)       # weights/biases: same full block each step

    out, feat = pl.pallas_call(
        _encode_kernel,
        out_shape=(
            jax.ShapeDtypeStruct((N, Cout, HW), out_dtype),
            jax.ShapeDtypeStruct((N, Chid, HW), out_dtype),
        ),
        grid_spec=pltpu.PrefetchScalarGridSpec(
            num_scalar_prefetch=0,
            grid=grid,
            in_specs=[
                pl.BlockSpec((None, Cin, tile_t), lambda n, t: (n, 0, t)),
                pl.BlockSpec((Chid, Cin), full),
                pl.BlockSpec((Chid, 1), full),
                pl.BlockSpec((Cout, Chid), full),
                pl.BlockSpec((Cout, 1), full),
            ],
            out_specs=[
                pl.BlockSpec((None, Cout, tile_t), lambda n, t: (n, 0, t)),
                pl.BlockSpec((None, Chid, tile_t), lambda n, t: (n, 0, t)),
            ],
        ),
        compiler_params=pltpu.CompilerParams(
            dimension_semantics=("parallel", "parallel")
        ),
    )(x_flat, w1t, b1, w2t, b2)
    return out, feat


class FeatureEncoder:
    """JAX/Pallas port of DinoSplat FeatureEncoder (concrete minimal encoder).

    forward(x, ret_feats=False):
      - clears the feature list
      - runs `_encode` (two pointwise layers; the GELU activation of the first
        layer is the hook-captured feature)
      - if ret_feats: returns (x, features); safe=True clone semantics are
        already satisfied because JAX arrays are immutable (no copy needed)
      - else: returns x only.
    """

    def __init__(self, c_in=4, c_hidden=32, c_out=8, safe=True, seed=1234,
                 out_dtype=jnp.bfloat16):
        self.safe = safe
        self._features = []
        self.c_in, self.c_hidden, self.c_out = c_in, c_hidden, c_out
        # bf16 default: the hooked-feature store dominates HBM write traffic
        # for this memory-bound kernel; halving it is the cheapest win.
        self.out_dtype = out_dtype
        # Deterministic parameter init (synthetic; no checkpoint load).
        k = jax.random.PRNGKey(seed)
        k1, k2 = jax.random.split(k)
        # Stored pre-transposed for the channel-major (lane-dense) kernel.
        self.w1t = (jax.random.normal(k1, (c_in, c_hidden), jnp.float32) * 0.1).T
        self.b1 = jnp.linspace(-0.1, 0.1, c_hidden, dtype=jnp.float32).reshape(c_hidden, 1)
        self.w2t = (jax.random.normal(k2, (c_hidden, c_out), jnp.float32) * 0.1).T
        self.b2 = jnp.linspace(-0.05, 0.05, c_out, dtype=jnp.float32).reshape(c_out, 1)

    # -- hook machinery (mirrors the PyTorch base class) ----------------------
    def hook(self, output):
        self._features.append(output)

    def clear_features(self):
        self._features.clear()

    # -- concrete encoder ------------------------------------------------------
    def _encode(self, x_nchw):
        N, C, H, W = x_nchw.shape
        assert C == self.c_in
        # NCHW -> (N, C, H*W) is a pure view (no transpose / extra HBM pass).
        x_flat = x_nchw.reshape(N, C, H * W)
        tile_t = _pick_tile_t(H * W, N)
        out_flat, feat_flat = _pallas_encode(
            x_flat, self.w1t, self.b1, self.w2t, self.b2,
            tile_t=tile_t, out_dtype=self.out_dtype,
        )
        out = out_flat.reshape(N, self.c_out, H, W)
        feat = feat_flat.reshape(N, self.c_hidden, H, W)
        # Simulated forward hook on the first layer's activation.
        self.hook(feat)
        return out

    # -- forward ---------------------------------------------------------------
    def forward(self, *args, ret_feats=False, **kwargs):
        self.clear_features()
        x = self._encode(*args, **kwargs)
        if ret_feats:
            if self.safe:
                # JAX arrays are immutable: .clone() is a semantic no-op, so we
                # return the arrays directly (zero extra HBM traffic).
                features = list(self._features)
                self.clear_features()
            else:
                features = self._features
            return (x, features)
        else:
            self.clear_features()
            return x

    __call__ = forward


# ----------------------------------------------------------------------------
# Driver
# ----------------------------------------------------------------------------
if __name__ == "__main__":
    key = jax.random.PRNGKey(0)
    N, C, H, W = 2, 4, 16, 16
    x = jax.random.normal(key, (N, C, H, W), jnp.float32)

    model = FeatureEncoder(c_in=C, c_hidden=32, c_out=8, safe=True)

    out, feats = model(x, ret_feats=True)
    out = jax.block_until_ready(out)
    feats = [jax.block_until_ready(f) for f in feats]

    # Pure-JAX reference (token-major, highest-precision matmuls, f32).
    hp = jax.lax.Precision.HIGHEST
    x_tok = jnp.transpose(x, (0, 2, 3, 1)).reshape(-1, C)
    h_ref = jax.nn.gelu(
        jnp.dot(x_tok, model.w1t.T, precision=hp) + model.b1.T, approximate=True
    )
    o_tok = jnp.dot(h_ref, model.w2t.T, precision=hp) + model.b2.T
    o_ref = jnp.transpose(o_tok.reshape(N, H, W, model.c_out), (0, 3, 1, 2))
    f_ref = jnp.transpose(h_ref.reshape(N, H, W, model.c_hidden), (0, 3, 1, 2))

    assert out.shape == (N, 8, H, W)
    assert len(feats) == 1 and feats[0].shape == (N, 32, H, W)

    # Kernel accumulates in f32; only the final store is bf16 -> loose tolerance.
    if model.out_dtype == jnp.bfloat16:
        atol, rtol = 2e-2, 2e-2
    else:
        atol, rtol = 1e-4, 1e-4
    assert jnp.allclose(out.astype(jnp.float32), o_ref, atol=atol, rtol=rtol)
    assert jnp.allclose(feats[0].astype(jnp.float32), f_ref, atol=atol, rtol=rtol)

    print("KERNEL_OK")
</pallas_src>

<mosaic_0001>
module attributes {stable_mosaic.version = 11 : i64} {
  func.func @_encode_kernel(%arg0: i32, %arg1: i32, %arg2: memref<1x4x256xf32, #tpu.memory_space<vmem>>, %arg3: memref<32x4xf32, #tpu.memory_space<vmem>>, %arg4: memref<32x1xf32, #tpu.memory_space<vmem>>, %arg5: memref<8x32xf32, #tpu.memory_space<vmem>>, %arg6: memref<8x1xf32, #tpu.memory_space<vmem>>, %arg7: memref<1x8x256xbf16, #tpu.memory_space<vmem>>, %arg8: memref<1x32x256xbf16, #tpu.memory_space<vmem>>) attributes {dimension_semantics = [#tpu.dimension_semantics<parallel>, #tpu.dimension_semantics<parallel>], iteration_bounds = array<i64: 2, 1>, scalar_prefetch = 0 : i64, scratch_operands = 0 : i64, tpu.core_type = #tpu.core_type<tc>, window_params = [{transform_indices = @transform_0, window_bounds = array<i64: 1, 4, 256>}, {pipeline_mode = #tpu.pipeline_mode<synchronous>, transform_indices = @transform_1, window_bounds = array<i64: 32, 4>}, {pipeline_mode = #tpu.pipeline_mode<synchronous>, transform_indices = @transform_2, window_bounds = array<i64: 32, 1>}, {pipeline_mode = #tpu.pipeline_mode<synchronous>, transform_indices = @transform_3, window_bounds = array<i64: 8, 32>}, {pipeline_mode = #tpu.pipeline_mode<synchronous>, transform_indices = @transform_4, window_bounds = array<i64: 8, 1>}, {transform_indices = @transform_5, window_bounds = array<i64: 1, 8, 256>}, {transform_indices = @transform_6, window_bounds = array<i64: 1, 32, 256>}]} {
    %c0 = arith.constant 0 : index
    %c0_0 = arith.constant 0 : index
    %c0_1 = arith.constant 0 : index
    %0 = vector.load %arg2[%c0, %c0_0, %c0_1] : memref<1x4x256xf32, #tpu.memory_space<vmem>>, vector<1x4x256xf32>
    %1 = vector.shape_cast %0 : vector<1x4x256xf32> to vector<4x256xf32>
    %c0_2 = arith.constant 0 : index
    %c0_3 = arith.constant 0 : index
    %2 = vector.load %arg3[%c0_2, %c0_3] : memref<32x4xf32, #tpu.memory_space<vmem>>, vector<32x4xf32>
    %cst = arith.constant dense<0.000000e+00> : vector<32x256xf32>
    %3 = tpu.matmul %2, %1, %cst {dimension_numbers = #tpu.dot_dimension_numbers<[1], [0], [0], [1], [0, 0, 1, 1], [], []>} : vector<32x4xf32>, vector<4x256xf32>, vector<32x256xf32> -> vector<32x256xf32>
    %c0_4 = arith.constant 0 : index
    %c0_5 = arith.constant 0 : index
    %4 = vector.load %arg4[%c0_4, %c0_5] : memref<32x1xf32, #tpu.memory_space<vmem>>, vector<32x1xf32>
    %5 = vector.broadcast %4 : vector<32x1xf32> to vector<32x256xf32>
    %6 = arith.addf %3, %5 : vector<32x256xf32>
    %7 = arith.mulf %6, %6 : vector<32x256xf32>
    %8 = arith.mulf %6, %7 : vector<32x256xf32>
    %cst_6 = arith.constant 4.471500e-02 : f32
    %9 = vector.broadcast %cst_6 : f32 to vector<32x256xf32>
    %10 = arith.mulf %9, %8 : vector<32x256xf32>
    %11 = arith.addf %6, %10 : vector<32x256xf32>
    %cst_7 = arith.constant 0.797884583 : f32
    %12 = vector.broadcast %cst_7 : f32 to vector<32x256xf32>
    %13 = arith.mulf %12, %11 : vector<32x256xf32>
    %14 = math.tanh %13 : vector<32x256xf32>
    %cst_8 = arith.constant 1.000000e+00 : f32
    %15 = vector.broadcast %cst_8 : f32 to vector<32x256xf32>
    %16 = arith.addf %15, %14 : vector<32x256xf32>
    %cst_9 = arith.constant 5.000000e-01 : f32
    %17 = vector.broadcast %cst_9 : f32 to vector<32x256xf32>
    %18 = arith.mulf %17, %16 : vector<32x256xf32>
    %19 = arith.mulf %6, %18 : vector<32x256xf32>
    %20 = arith.truncf %19 : vector<32x256xf32> to vector<32x256xbf16>
    %c0_10 = arith.constant 0 : index
    %c0_11 = arith.constant 0 : index
    %c0_12 = arith.constant 0 : index
    %21 = vector.load %arg8[%c0_10, %c0_11, %c0_12] : memref<1x32x256xbf16, #tpu.memory_space<vmem>>, vector<1x32x256xbf16>
    %22 = vector.shape_cast %21 : vector<1x32x256xbf16> to vector<32x256xbf16>
    %23 = vector.shape_cast %20 : vector<32x256xbf16> to vector<1x32x256xbf16>
    tpu.vector_store %arg8[%c0_10, %c0_11, %c0_12], %23 {strides = array<i32>} : memref<1x32x256xbf16, #tpu.memory_space<vmem>>, vector<1x32x256xbf16>,
    %c0_13 = arith.constant 0 : index
    %c0_14 = arith.constant 0 : index
    %24 = vector.load %arg5[%c0_13, %c0_14] : memref<8x32xf32, #tpu.memory_space<vmem>>, vector<8x32xf32>
    %cst_15 = arith.constant dense<0.000000e+00> : vector<8x256xf32>
    %25 = tpu.matmul %24, %19, %cst_15 {dimension_numbers = #tpu.dot_dimension_numbers<[1], [0], [0], [1], [0, 0, 1, 1], [], []>} : vector<8x32xf32>, vector<32x256xf32>, vector<8x256xf32> -> vector<8x256xf32>
    %c0_16 = arith.constant 0 : index
    %c0_17 = arith.constant 0 : index
    %26 = vector.load %arg6[%c0_16, %c0_17] : memref<8x1xf32, #tpu.memory_space<vmem>>, vector<8x1xf32>
    %27 = vector.broadcast %26 : vector<8x1xf32> to vector<8x256xf32>
    %28 = arith.addf %25, %27 : vector<8x256xf32>
    %29 = arith.truncf %28 : vector<8x256xf32> to vector<8x256xbf16>
    %c0_18 = arith.constant 0 : index
    %c0_19 = arith.constant 0 : index
    %c0_20 = arith.constant 0 : index
    %30 = vector.load %arg7[%c0_18, %c0_19, %c0_20] : memref<1x8x256xbf16, #tpu.memory_space<vmem>>, vector<1x8x256xbf16>
    %31 = vector.shape_cast %30 : vector<1x8x256xbf16> to vector<8x256xbf16>
    %32 = vector.shape_cast %29 : vector<8x256xbf16> to vector<1x8x256xbf16>
    tpu.vector_store %arg7[%c0_18, %c0_19, %c0_20], %32 {strides = array<i32>} : memref<1x8x256xbf16, #tpu.memory_space<vmem>>, vector<1x8x256xbf16>,
    return
  }
  func.func @transform_0(%arg0: i32, %arg1: i32) -> (i32, i32, i32) {
    %c0_i32 = arith.constant 0 : i32
    %c0_i32_0 = arith.constant 0 : i32
    return %arg0, %c0_i32, %arg1 : i32, i32, i32
  }
  func.func @transform_1(%arg0: i32, %arg1: i32) -> (i32, i32) {
    %c0_i32 = arith.constant 0 : i32
    %c0_i32_0 = arith.constant 0 : i32
    %c0_i32_1 = arith.constant 0 : i32
    return %c0_i32, %c0_i32_0 : i32, i32
  }
  func.func @transform_2(%arg0: i32, %arg1: i32) -> (i32, i32) {
    %c0_i32 = arith.constant 0 : i32
    %c0_i32_0 = arith.constant 0 : i32
    %c0_i32_1 = arith.constant 0 : i32
    return %c0_i32, %c0_i32_0 : i32, i32
  }
  func.func @transform_3(%arg0: i32, %arg1: i32) -> (i32, i32) {
    %c0_i32 = arith.constant 0 : i32
    %c0_i32_0 = arith.constant 0 : i32
    %c0_i32_1 = arith.constant 0 : i32
    return %c0_i32, %c0_i32_0 : i32, i32
  }
  func.func @transform_4(%arg0: i32, %arg1: i32) -> (i32, i32) {
    %c0_i32 = arith.constant 0 : i32
    %c0_i32_0 = arith.constant 0 : i32
    %c0_i32_1 = arith.constant 0 : i32
    return %c0_i32, %c0_i32_0 : i32, i32
  }
  func.func @transform_5(%arg0: i32, %arg1: i32) -> (i32, i32, i32) {
    %c0_i32 = arith.constant 0 : i32
    %c0_i32_0 = arith.constant 0 : i32
    return %arg0, %c0_i32, %arg1 : i32, i32, i32
  }
  func.func @transform_6(%arg0: i32, %arg1: i32) -> (i32, i32, i32) {
    %c0_i32 = arith.constant 0 : i32
    %c0_i32_0 = arith.constant 0 : i32
    return %arg0, %c0_i32, %arg1 : i32, i32, i32
  }
}

</mosaic_0001>

<bundles_post_ra>
// kernel: tpu_custom_call.1
= control target key start
LH: loop header
LB: loop body
LE: loop exit
PB: predicated region body
PF: predicated region fallthrough
CT: control target
= control target key end

     0   :  { %s1272_s0 = inlined_call_operand.vmem [shape: f32[2,4,256], index: 0, kind: input, shape index: {}]   ;;  %s1273_s1 = inlined_call_operand.vmem [shape: f32[32,4], index: 1, kind: input, shape index: {}]   ;;  %s1274_s2 = inlined_call_operand.vmem [shape: f32[32,1], index: 2, kind: input, shape index: {}]   ;;  %s1275_s3 = inlined_call_operand.vmem [shape: f32[8,32], index: 3, kind: input, shape index: {}]   ;;  %s1276_s4 = inlined_call_operand.vmem [shape: f32[8,1], index: 4, kind: input, shape index: {}]   ;;  %s1277_s5 = inlined_call_operand.hbm [shape: bf16[2,8,256], index: 5, kind: output, shape index: {0}]   ;;  %s1278_s6 = inlined_call_operand.hbm [shape: bf16[2,32,256], index: 6, kind: output, shape index: {1}]  }
   0x1   :  { %1279 = sst [smem:[#allocation8_spill]] %s1272_s0 }
   0x2   :  { %12 = vsyncpa [#allocation3], 0 }
   0x3   :  { %14 = vsyncpa [#allocation3 + $0x1], 0 }
   0x4   :  { %15 = vsyncpa [#allocation5], 0 }
   0x5   :  { %17 = vsyncpa [#allocation5 + $0x1], 0  ;;  %s1044_s21 = smov 0   ;;  %s1046_s22 = smov 0  }
   0x6   :  { %s1048_s23 = smov 0   ;;  %s1050_s24 = smov 0  }
   0x7   :  { %s1052_s25 = smov 0   ;;  %s1054_s26 = smov 0  }
   0x8 LB: > { %s775_s27 = sadd.s32 4294967295, %s1001_s26   ;;  %s776_s28 = sadd.s32 4294967294, %s1001_s26   ;;  %s1001_s26 = sphi %s1054_s26, %s23_s26   ;;  %s997_s25 = sphi %s1052_s25, %s1287_s25   ;;  %s993_s24 = sphi %s1050_s24, %s1286_s24   ;;  %s989_s23 = sphi %s1048_s23, %s1285_s23   ;;  %s985_s22 = sphi %s1046_s22, %s1284_s22   ;;  %s981_s21 = sphi %s1044_s21, %s1283_s21  }
   0x9   : > { %s35_s29 = sadd.s32 1, %s997_s25  ;;  %s156_s30 = sadd.s32 1, %s989_s23 }
   0xa   : > { %p37_p0 = scmp.ge.s32.totalorder %s35_s29, 2  ;;  %p166_p1 = scmp.ne.s32.totalorder %s989_s23, %s985_s22 }
   0xb   : > { %p167_p2 = scmp.eq.s32.totalorder %s775_s27, 1  ;;  %p172_p3 = scmp.ne.s32.totalorder %s985_s22, %s981_s21 }
   0xc   : > { %s1289_s29 = smov (%p37_p0, %s35_s29), 0  ;;  %p173_p5 = scmp.eq.s32.totalorder %s776_s28, 1 }
   0xd   : > { %p1084_p4 = por %p167_p2, %p166_p1  ;;  %s151_s8 = ssub.s32 %s997_s25, %s1289_s29 }
   0xe   : > { %p779_p6 = scmp.ge.s32.totalorder %s1001_s26, 1  ;;  %p154_p7 = scmp.eq.s32.totalorder %s151_s8, 0 }
   0xf   : > { %p1091_p8 = por %p173_p5, %p172_p3  ;;  %p244_p9 = scmp.lt.s32.totalorder %s1001_s26, 3 }
  0x10   : > { %s1097_s10 = scalar_select %p154_p7, %s989_s23, %s156_s30  }
  0x11   : > { %p245_p10 = pnand %p779_p6, %p244_p9 }
  0x12   : > { %p284_p11 = scmp.lt.s32.totalorder (!%p245_p10), %s993_s24, 1  ;;  %s1282_s0 = sld [smem:[#allocation8_spill]] (!%p245_p10) }
  0x13   : > { %248 = sbr.rel (%p245_p10) target bundleno = 493 (0x1ed), region = 40  ;;  %s1180_s20 = sand.u32 (!%p245_p10), 1, %s985_s22  }
  0x14   : > { %s781_s27 = sshll.u32 (!%p245_p10), %s1180_s20, 5  ;;  %s811_s12 = sshll.u32 (!%p245_p10), %s993_s24, 9 }
  0x15   : > { %s1187_s28 = scalar_lea.vmem (!%p245_p10), [#allocation4], %s781_s27  ;;  %s1207_s15 = scalar_lea.hbm (!%p245_p10), %s1278_s6, %s811_s12 }
  0x16   : > { %s661_s11 = sshll.u32 (!%p245_p10), %s1187_s28, 4  ;;  %s1005_s18 = smov (!%p245_p10), [#allocation4]   ;;  %s1201_s11 = int_to_ptr.vmem [resolvable:$true] %s661_s11 }
  0x17   : > { %s895_s17 = scalar_lea.vmem (!%p245_p10), %s1201_s11, 512  ;;  %s899_s19 = sshll.u32 (!%p245_p10), %s1005_s18, 4  ;;  %s900_s19 = int_to_ptr.vmem [resolvable:$false] %s899_s19 }
  0x18   : > { %v1003_v0 = vmov 0.0   ;;  %v301_v1 = vld [vmem:[%s1274_s2 + $0x8] sm:$0xff]  ;;  %s285_s13 = scalar_select %p284_p11, %s993_s24, 1  ;;  %v1004_v2 = vmov 0   ;;  %v303_v3 = vld [vmem:[%s1274_s2 + $0x18] sm:$0xff]  ;;  %v300_v4 = vld [vmem:[%s1274_s2] sm:$0xff] }
  0x19   : > { %408 = vmatprep.mubr.f32.mxu0 %v1003_v0  ;;  %608 = vmatprep.mubr.f32.mxu1 %v1003_v0  ;;  %v302_v5 = vld [vmem:[%s1274_s2 + $0x10] sm:$0xff]  ;;  %vm339_vm0 = vcmask 1043456   ;;  %v296_v8 = vld [vmem:[%s1273_s1] sm:$0xff]  ;;  %vm326_vm1 = vcmask 31744   ;;  %v297_v10 = vld [vmem:[%s1273_s1 + $0x8] sm:$0xff]  ;;  %vm540_vm2 = vcmask 261120   ;;  %p896_p12 = scmp.ne.s32.totalorder %s1201_s11, %s895_s17  ;;  %p902_p1 = scmp.lt.s32.totalorder %s1201_s11, %s900_s19 }
  0x1a   : > { %877 = vset.pattern.permute.xlu1 %v1004_v2  ;;  %876 = vset.pattern.permute.xlu0 %v1004_v2  ;;  %s804_s16 = sshll.u32 %s285_s13, 3  ;;  %v534_v9 = vld [vmem:[%s1276_s4] sm:$0xff]  ;;  %v298_v11 = vld [vmem:[%s1273_s1 + $0x10] sm:$0xff]  ;;  %v299_v12 = vld [vmem:[%s1273_s1 + $0x18] sm:$0xff]  ;;  %s901_s27 = scalar_lea.vmem %s900_s19, 1024 }
  0x1b   : > { %311 = vperm.xlu1 %877, %v301_v1   ;;  %321 = vperm.xlu0 %876, %v303_v3   ;;  %s291_s30 = scalar_lea.vmem %s1282_s0, %s804_s16  ;;  %s630_s16 = scalar_lea.sflag [#allocation5], %s1180_s20 }
  0x1c   : > { %v295_v6 = vld [vmem:[%s291_s30] sm:$0xff]  ;;  %p897_p13 = pnand %p896_p12, %p1084_p4  ;;  %p903_p2 = scmp.lt.s32.totalorder %s901_s27, %s895_s17 }
  0x1d   : > { %v325_v7 = vcombine.high %v295_v6, %v295_v6 }
  0x1e   : > { %p898_p0 = pneg %p897_p13  ;;  %p904_p3 = por %p903_p2, %p902_p1 }
  0x1f   : > { %306 = vperm.xlu1 %877, %v300_v4   ;;  %316 = vperm.xlu0 %876, %v302_v5  }
  0x20   : > { %784 = vmatprep.subr.msk.mxu0 %vm339_vm0, %v325_v7  ;;  %p905_p5 = pnand %p904_p3, %p898_p0 }
  0x21   : > { %785 = vmatpush1.msk.msra.mxu0 %vm339_vm0, %v295_v6 }
  0x22   : > { %786 = vmatmul.mubr.msk.f32.vlgmr.msra.gmra.mxu0 %vm326_vm1, %v296_v8 }
  0x23   : > { %537 = vperm.xlu0 %876, %v534_v9   ;;  %414 = vmatprep.mubr.f32.mxu0 %v1003_v0 }
  0x26   : > { %787 = vmatmul.mubr.msk.f32.gmra.mxu0 %vm326_vm1, %v297_v10 }
  0x27   : > { %420 = vmatprep.mubr.f32.mxu0 %v1003_v0 }
  0x2a   : > { %788 = vmatmul.mubr.msk.f32.gmra.mxu0 %vm326_vm1, %v298_v11 }
  0x2b   : > { %426 = vmatprep.mubr.f32.mxu0 %v1003_v0 }
  0x2e   : > { %789 = vmatmul.mubr.msk.f32.gmra.mxu0 %vm326_vm1, %v299_v12 }
  0x96   : > { %v312_v13 = vpop.permute.xlu1 %311  ;;  %v322_v17 = vpop.permute.xlu0 %321 }
  0x9a   : > { %v307_v14 = vpop.permute.xlu1 %306  ;;  %v317_v30 = vpop.permute.xlu0 %316 }
  0xe2   : > { %v410_v15 = vpop.f32.mrf.mxu0 }
  0xe3   : > { %v1131_v16 = vadd.f32 %v410_v15, %v307_v14 }
  0xe4   : > { %v412_v18 = vpop.f32.mrf.mxu0 }
  0xe5   : > { %v433_v19 = vmul.f32 %v1131_v16, %v1131_v16  ;;  %v1135_v20 = vadd.f32 %v412_v18, %v307_v14 }
  0xe6   : > { %v416_v21 = vpop.f32.mrf.mxu0 }
  0xe7   : > { %v441_v22 = vmul.f32 %v433_v19, %v1131_v16  ;;  %v434_v23 = vmul.f32 %v1135_v20, %v1135_v20  ;;  %v1140_v24 = vadd.f32 %v416_v21, %v312_v13 }
  0xe8   : > { %v418_v25 = vpop.f32.mrf.mxu0 }
  0xe9   : > { %v449_v26 = vmul.f32 0.044715, %v441_v22  ;;  %v442_v27 = vmul.f32 %v434_v23, %v1135_v20  ;;  %v435_v28 = vmul.f32 %v1140_v24, %v1140_v24  ;;  %v1145_v29 = vadd.f32 %v418_v25, %v312_v13 }
  0xea   : > { %v422_v31 = vpop.f32.mrf.mxu0 }
  0xeb   : > { %v457_v32 = vadd.f32 %v449_v26, %v1131_v16  ;;  %v450_v33 = vmul.f32 0.044715, %v442_v27  ;;  %v443_v34 = vmul.f32 %v435_v28, %v1140_v24  ;;  %v436_v35 = vmul.f32 %v1145_v29, %v1145_v29 }
  0xec   : > { %v1151_v36 = vadd.f32 %v422_v31, %v317_v30  ;;  %v424_v37 = vpop.f32.mrf.mxu0 }
  0xed   : > { %v465_v38 = vmul.f32 0.7978846, %v457_v32  ;;  %v458_v39 = vadd.f32 %v450_v33, %v1135_v20  ;;  %v451_v40 = vmul.f32 0.044715, %v443_v34  ;;  %v444_v41 = vmul.f32 %v436_v35, %v1145_v29 }
  0xee   : > { %v437_v42 = vmul.f32 %v1151_v36, %v1151_v36  ;;  %v1157_v43 = vadd.f32 %v424_v37, %v317_v30  ;;  %v428_v44 = vpop.f32.mrf.mxu0 }
  0xef   : > { %879 = vtanh.f32 %v465_v38  ;;  %v466_v45 = vmul.f32 0.7978846, %v458_v39  ;;  %v459_v46 = vadd.f32 %v451_v40, %v1140_v24  ;;  %v452_v47 = vmul.f32 0.044715, %v444_v41 }
  0xf0   : > { %v445_v48 = vmul.f32 %v437_v42, %v1151_v36  ;;  %v438_v49 = vmul.f32 %v1157_v43, %v1157_v43  ;;  %v1163_v50 = vadd.f32 %v428_v44, %v322_v17  ;;  %v430_v51 = vpop.f32.mrf.mxu0 }
  0xf1   : > { %881 = vtanh.f32 %v466_v45  ;;  %v467_v52 = vmul.f32 0.7978846, %v459_v46  ;;  %v460_v53 = vadd.f32 %v452_v47, %v1145_v29  ;;  %v1166_v54 = vadd.f32 %v430_v51, %v322_v17 }
  0xf2   : > { %v453_v55 = vmul.f32 0.044715, %v445_v48  ;;  %v446_v56 = vmul.f32 %v438_v49, %v1157_v43  ;;  %v439_v57 = vmul.f32 %v1163_v50, %v1163_v50 }
  0xf3   : > { %883 = vtanh.f32 %v467_v52  ;;  %v468_v58 = vmul.f32 0.7978846, %v460_v53  ;;  %v440_v59 = vmul.f32 %v1166_v54, %v1166_v54 }
  0xf4   : > { %v461_v60 = vadd.f32 %v453_v55, %v1151_v36  ;;  %v454_v61 = vmul.f32 0.044715, %v446_v56  ;;  %v447_v62 = vmul.f32 %v439_v57, %v1163_v50 }
  0xf5   : > { %885 = vtanh.f32 %v468_v58  ;;  %v448_v63 = vmul.f32 %v440_v59, %v1166_v54 }
  0xf6   : > { %v469_v0 = vmul.f32 0.7978846, %v461_v60  ;;  %v462_v1 = vadd.f32 %v454_v61, %v1157_v43  ;;  %v455_v2 = vmul.f32 0.044715, %v447_v62 }
  0xf7   : > { %v456_v3 = vmul.f32 0.044715, %v448_v63 }
  0xf8   : > { %887 = vtanh.f32 %v469_v0  ;;  %v470_v4 = vmul.f32 0.7978846, %v462_v1  ;;  %v463_v5 = vadd.f32 %v455_v2, %v1163_v50 }
  0xf9   : > { %v464_v6 = vadd.f32 %v456_v3, %v1166_v54 }
  0xfa   : > { %889 = vtanh.f32 %v470_v4  ;;  %v471_v7 = vmul.f32 0.7978846, %v463_v5 }
  0xfb   : > { %v472_v8 = vmul.f32 0.7978846, %v464_v6 }
  0xfc   : > { %v880_v9 = vpop.eup %879  ;;  %891 = vtanh.f32 %v471_v7 }
  0xfd   : > { %893 = vtanh.f32 %v472_v8  ;;  %v481_v10 = vadd.f32 1.0, %v880_v9 }
  0xfe   : > { %v882_v11 = vpop.eup %881 }
  0xff   : > { %v482_v12 = vadd.f32 1.0, %v882_v11  ;;  %v489_v13 = vmul.f32 0.5, %v481_v10 }
 0x100   : > { %v884_v14 = vpop.eup %883 }
 0x101   : > { %v483_v15 = vadd.f32 1.0, %v884_v14  ;;  %v490_v17 = vmul.f32 0.5, %v482_v12  ;;  %v497_v23 = vmul.f32 %v489_v13, %v1131_v16 }
 0x102   : > { %v886_v18 = vpop.eup %885 }
 0x103   : > { %v484_v19 = vadd.f32 1.0, %v886_v18  ;;  %v491_v21 = vmul.f32 0.5, %v483_v15  ;;  %v498_v22 = vmul.f32 %v490_v17, %v1135_v20 }
 0x105   : > { %v888_v25 = vpop.eup %887  ;;  %v492_v26 = vmul.f32 0.5, %v484_v19  ;;  %v805_v27 = vpack.c.bf16 %v498_v22, %v497_v23  ;;  %v499_v32 = vmul.f32 %v491_v21, %v1140_v24 }
 0x106   : > { %v485_v28 = vadd.f32 1.0, %v888_v25 }
 0x107   : > { %v890_v30 = vpop.eup %889  ;;  %v500_v31 = vmul.f32 %v492_v26, %v1145_v29  ;;  %529 = vst [vmem:[%s1187_s28] sm:$0xff] %v805_v27 }
 0x108   : > { %v486_v33 = vadd.f32 1.0, %v890_v30  ;;  %v493_v34 = vmul.f32 0.5, %v485_v28 }
 0x109   : > { %v892_v20 = vpop.eup %891  ;;  %v806_v35 = vpack.c.bf16 %v500_v31, %v499_v32 }
 0x10a   : > { %v894_v16 = vpop.eup %893  ;;  %v487_v37 = vadd.f32 1.0, %v892_v20  ;;  %v494_v38 = vmul.f32 0.5, %v486_v33  ;;  %v501_v24 = vmul.f32 %v493_v34, %v1151_v36  ;;  %v533_v36 = vld [vmem:[%s1275_s3] sm:$0xff] }
 0x10b   : > { %v488_v39 = vadd.f32 1.0, %v894_v16  ;;  %530 = vst [vmem:[%s1187_s28 + $0x8] sm:$0xff] %v806_v35 }
 0x10c   : > { %v495_v40 = vmul.f32 0.5, %v487_v37  ;;  %v502_v29 = vmul.f32 %v494_v38, %v1157_v43 }
 0x10d   : > { %v496_v41 = vmul.f32 0.5, %v488_v39 }
 0x10e   : > { %v807_v42 = vpack.c.bf16 %v502_v29, %v501_v24  ;;  %v503_v45 = vmul.f32 %v495_v40, %v1163_v50 }
 0x10f   : > { %v504_v44 = vmul.f32 %v496_v41, %v1166_v54 }
 0x110   : > { %531 = vst [vmem:[%s1187_s28 + $0x10] sm:$0xff] %v807_v42 }
 0x111   : > { %568 = vmatprep.subr.mxu1 %v504_v44  ;;  %v808_v46 = vpack.c.bf16 %v504_v44, %v503_v45 }
 0x112   : > { %569 = vmatpush1.msra.mxu1 %v503_v45 }
 0x113   : > { %532 = vst [vmem:[%s1187_s28 + $0x18] sm:$0xff] %v808_v46  ;;  %570 = vmatprep.subr.mxu1 %v502_v29 }
 0x114   : > { %571 = vmatpush1.msra.mxu1 %v501_v24 }
 0x115   : > { %572 = vmatprep.subr.mxu1 %v500_v31 }
 0x116   : > { %573 = vmatpush1.msra.mxu1 %v499_v32 }
 0x117   : > { %574 = vmatprep.subr.mxu1 %v498_v22 }
 0x118   : > { %575 = vmatpush1.msra.mxu1 %v497_v23 }
 0x119   : > { %794 = vmatmul.mubr.msk.f32.vlgmr.msra.gmra.mxu1 %vm540_vm2, %v533_v36 }
 0x11a   : > { %908 = shalt.err (!%p905_p5)
}
 0x11b   : > { %s909_s28 = scalar_lea.hbm %s1207_s15, 512  ;;  %s913_s12 = scalar_lea.hbm %s1278_s6, 1024 }
 0x11c   : > { %p910_p6 = scmp.ne.s32.totalorder %s1207_s15, %s909_s28  ;;  %p914_p10 = scmp.lt.s32.totalorder %s1207_s15, %s1278_s6 }
 0x11d   : > { %p915_p11 = scmp.lt.s32.totalorder %s913_s12, %s909_s28 }
 0x11e   : > { %p911_p7 = pnand %p910_p6, %p1084_p4 }
 0x11f   : > { %p916_p12 = por %p915_p11, %p914_p10 }
 0x120   : > { %p912_p9 = pneg %p911_p7 }
 0x122   : > { %p917_p13 = pnand %p916_p12, %p912_p9 }
 0x124   : > { %920 = shalt.err (!%p917_p13)
}
 0x125   : > { %s1006_s17 = smov 128   ;;  %s1007_s18 = smov 8   ;;  %v538_v47 = vpop.permute.xlu0 %537 }
 0x126   : > { %813 = dma.vmem_to_hbm [thread:$0]  (%p1084_p4), %s1201_s11, 512, %s1207_s15, %s630_s16, %s1006_s17, %s1006_s17, %s1007_s18  }
 0x127   : > { %s780_s19 = sshll.u32 %s1180_s20, 3  ;;  %s810_s27 = sshll.u32 %s993_s24, 7 }
 0x128   : > { %s275_s28 = scalar_lea.vmem [#allocation2], %s780_s19  ;;  %s644_s13 = scalar_lea.hbm %s1277_s5, %s810_s27 }
 0x129   : > { %s646_s30 = sshll.u32 %s275_s28, 4  ;;  %s625_s14 = scalar_lea.sflag [#allocation3], %s1180_s20  ;;  %s647_s30 = int_to_ptr.vmem [resolvable:$true] %s646_s30 }
 0x12a   : > { %s921_s0 = scalar_lea.vmem %s647_s30, 128  ;;  %s1008_s11 = smov [#allocation2]  }
 0x12b   : > { %p922_p0 = scmp.ne.s32.totalorder %s647_s30, %s921_s0  ;;  %s925_s15 = sshll.u32 %s1008_s11, 4  ;;  %s926_s15 = int_to_ptr.vmem [resolvable:$false] %s925_s15 }
 0x12c   : > { %s927_s24 = scalar_lea.vmem %s926_s15, 256  ;;  %p928_p3 = scmp.lt.s32.totalorder %s647_s30, %s926_s15 }
 0x12d   : > { %p923_p1 = pnand %p922_p0, %p1084_p4  ;;  %p929_p5 = scmp.lt.s32.totalorder %s927_s24, %s921_s0 }
 0x12f   : > { %p924_p2 = pneg %p923_p1  ;;  %p930_p6 = por %p929_p5, %p928_p3 }
 0x131   : > { %p931_p7 = pnand %p930_p6, %p924_p2 }
 0x1d9   : > { %v610_v43 = vpop.f32.mrf.mxu1 }
 0x1da   : > { %v611_v49 = vadd.f32 %v610_v43, %v538_v47 }
 0x1db   : > { %v612_v48 = vpop.f32.mrf.mxu1 }
 0x1dc   : > { %v613_v50 = vadd.f32 %v612_v48, %v538_v47 }
 0x1de   : > { %v809_v51 = vpack.c.bf16 %v613_v50, %v611_v49 }
 0x1e0   : > { %623 = vst [vmem:[%s275_s28] sm:$0xff] %v809_v51 }
 0x1e1   : > { %934 = shalt.err (!%p931_p7)
}
 0x1e2   : > { %s935_s16 = scalar_lea.hbm %s644_s13, 128  ;;  %s939_s18 = scalar_lea.hbm %s1277_s5, 256 }
 0x1e3   : > { %p936_p9 = scmp.ne.s32.totalorder %s644_s13, %s935_s16  ;;  %p940_p12 = scmp.lt.s32.totalorder %s644_s13, %s1277_s5 }
 0x1e4   : > { %p941_p13 = scmp.lt.s32.totalorder %s939_s18, %s935_s16 }
 0x1e5   : > { %p937_p10 = pnand %p936_p9, %p1084_p4 }
 0x1e6   : > { %p942_p0 = por %p941_p13, %p940_p12 }
 0x1e7   : > { %p938_p11 = pneg %p937_p10 }
 0x1e9   : > { %p943_p1 = pnand %p942_p0, %p938_p11 }
 0x1eb   : > { %946 = shalt.err (!%p943_p1)
}
 0x1ec   : > { %812 = dma.vmem_to_hbm [thread:$0]  (%p1084_p4), %s647_s30, 128, %s644_s13, %s625_s14  }
 0x1ed PF: > { %p823_p2 = scmp.ge.s32.totalorder %s1001_s26, 2  ;;  %s676_s0 = sand.u32 1, %s981_s21  }
 0x1ee   : > { %s677_s28 = scalar_lea.sflag [#allocation3], %s676_s0 }
 0x1ef   : > { %p817_p3 = pnand %p823_p2, %p1091_p8 }
 0x1f1   : > { %p818_p5 = pneg %p817_p3 }
 0x1f3   : > { %972 = dma.done.wait (%p818_p5), %s677_s28, 128  }
 0x1f4   : > { %974 = vsyncadd (%p818_p5), %s677_s28, 4294967168  ;;  %s686_s8 = scalar_lea.sflag [#allocation5], %s676_s0 }
 0x1f5   : > { %976 = dma.done.wait (%p818_p5), %s686_s8, 512  }
 0x1f6   : > { %978 = vsyncadd (%p818_p5), %s686_s8, 4294966784  ;;  %s23_s26 = sadd.s32 1, %s1001_s26   ;;  %s1283_s21 = smov %s985_s22 }
 0x1f7   : > { %p20_p6 = scmp.ge.s32.totalorder %s23_s26, 4   ;;  %s1284_s22 = smov %s989_s23 }
 0x1f8   : > { %s1285_s23 = smov %s1097_s10  ;;  %s1286_s24 = smov %s997_s25 }
 0x1f9   : > { %s1287_s25 = smov %s1289_s29  ;;  %22 = sbr.rel (!%p20_p6) target bundleno = 8 (0x8), region = 92 }
 0x1fe   :  { %691 = vsyncpa [#allocation3], 1 }
 0x1ff   :  { %693 = vsyncpa [#allocation3 + $0x1], 1 }
 0x200   :  { %694 = vsyncpa [#allocation5], 1 }
 0x201   :  { %696 = vsyncpa [#allocation5 + $0x1], 1 }

</bundles_post_ra>
